<compile_context>
chip_gen: v6e
topology: v6e:2x2x1
jax: 0.10.0
libtpu: 0.0.40
codegen_flags: <defaults>
</compile_context>

<pallas_src>
import numpy as np
from math import pi

import jax
import jax.numpy as jnp
from jax.experimental import pallas as pl
from jax.experimental.pallas import tpu as pltpu


def gaussian2D_unnormalized(shape=(9, 9), sigma=1.0):
    """Same as the PyTorch helper (MATLAB fspecial-style unnormalized Gaussian)."""
    m, n = [(ss - 1.0) / 2.0 for ss in shape]
    y, x = np.ogrid[-m:m + 1, -n:n + 1]
    h = np.exp(-(x * x + y * y) / (2.0 * sigma * sigma))
    h[h < np.finfo(h.dtype).eps * h.max()] = 0
    return jnp.asarray(h, dtype=jnp.float32)


def _make_blur_kernel(H, W, K):
    pad = K // 2

    def kernel(x_ref, tw_ref, th_ref, o_ref, xpad_ref, hpad_ref):
        # x_ref   : (1, 1, H, W)        VMEM  - one (batch, emitter) plane
        # tw_ref  : (C*K,)              SMEM  - horizontal taps  exp(-dx^2/(2 s^2))
        # th_ref  : (C*K,)              SMEM  - vertical taps * 1/(2*pi*s^2)
        # o_ref   : (1, 1, H, W)        VMEM  - output block, resident across the C axis
        # xpad_ref: (H, W + 2*pad)      VMEM  - input plane with zero W-halo
        # hpad_ref: (H + 2*pad, W)      VMEM  - horizontal-pass result with zero H-halo
        c = pl.program_id(1)
        base = c * K

        # Output accumulator: zero once per batch element (C is the innermost,
        # "arbitrary" reduction axis; the output block stays resident across it).
        @pl.when(c == 0)
        def _():
            o_ref[...] = jnp.zeros_like(o_ref)

        # Halo-only zeroing (interior is written exactly once per step below).
        xpad_ref[:, 0:pad] = jnp.zeros((H, pad), jnp.float32)
        xpad_ref[:, pad + W:2 * pad + W] = jnp.zeros((H, pad), jnp.float32)
        hpad_ref[0:pad, :] = jnp.zeros((pad, W), jnp.float32)
        hpad_ref[pad + H:2 * pad + H, :] = jnp.zeros((pad, W), jnp.float32)

        # Stage the current emitter plane into the W-padded scratch
        # (single HBM read; conv boundary handled in VMEM).
        xpad_ref[:, pad:pad + W] = x_ref[0, 0]

        # --- Horizontal K-tap pass ------------------------------------------
        # Taps are symmetric (g[k] == g[K-1-k]) even after the per-emitter power,
        # so mirrored taps are paired: 5 multiplies instead of 9.  All shifted
        # operands are ref slices of the padded VMEM scratch (vld slots), and the
        # result is stored once into hpad_ref which the vertical pass re-slices.
        h = tw_ref[base + pad] * xpad_ref[:, pad:pad + W]
        for k in range(pad):
            h = h + tw_ref[base + k] * (
                xpad_ref[:, k:k + W] + xpad_ref[:, K - 1 - k:K - 1 - k + W])
        hpad_ref[pad:pad + H, :] = h

        # --- Vertical K-tap pass + accumulation over emitters ----------------
        v = th_ref[base + pad] * hpad_ref[pad:pad + H, :]
        for k in range(pad):
            v = v + th_ref[base + k] * (
                hpad_ref[k:k + H, :] + hpad_ref[K - 1 - k:K - 1 - k + H, :])
        o_ref[0, 0] += v.astype(o_ref.dtype)

    return kernel


def blur_layer_forward(PSFs, gauss, stds):
    """PSFs: (N, C, H, W) f32; gauss: (K, K) f32; stds: (C, 1) f32 -> (N, 1, H, W)."""
    N, C, H, W = PSFs.shape
    K = gauss.shape[0]
    pad = K // 2

    # Separable per-emitter taps (plain JAX glue, O(C*K) work):
    #   w2d[c,i,j] = 1/(2*pi*s2) * gauss[i,j]^(1/s2) = th[c,i] * tw[c,j]
    s2 = (stds.astype(jnp.float32).reshape(C)) ** 2                 # (C,)
    g1d = gauss[pad, :]                                             # (K,) = exp(-k^2/2)
    tw = jnp.power(g1d[None, :], 1.0 / s2[:, None])                 # (C, K)
    th = tw * (1.0 / (2.0 * pi * s2))[:, None]                      # (C, K), norm folded
    tw_flat = tw.reshape(C * K).astype(jnp.float32)                 # flat 1D SMEM tables
    th_flat = th.reshape(C * K).astype(jnp.float32)

    # VMEM budget: double-buffered (1,1,H,W) in/out blocks + two padded scratches.
    plane = H * W * 4
    need = (2 * plane                       # input block, double buffered
            + 2 * plane                     # output block, double buffered
            + H * (W + 2 * pad) * 4         # xpad scratch
            + (H + 2 * pad) * W * 4)        # hpad scratch
    vmem_limit = int(min(64 * 1024 * 1024, max(16 * 1024 * 1024, 2 * need)))

    out = pl.pallas_call(
        _make_blur_kernel(H, W, K),
        out_shape=jax.ShapeDtypeStruct((N, 1, H, W), PSFs.dtype),
        grid=(N, C),                         # C innermost: reduction axis last
        in_specs=[
            pl.BlockSpec((1, 1, H, W), lambda n, c: (n, c, 0, 0)),
            pl.BlockSpec(memory_space=pltpu.MemorySpace.SMEM),
            pl.BlockSpec(memory_space=pltpu.MemorySpace.SMEM),
        ],
        out_specs=pl.BlockSpec((1, 1, H, W), lambda n, c: (n, 0, 0, 0)),
        scratch_shapes=[
            pltpu.VMEM((H, W + 2 * pad), jnp.float32),
            pltpu.VMEM((H + 2 * pad, W), jnp.float32),
        ],
        compiler_params=pltpu.CompilerParams(
            dimension_semantics=("parallel", "arbitrary"),
            vmem_limit_bytes=vmem_limit),
    )(PSFs, tw_flat, th_flat)
    return out


if __name__ == "__main__":
    key = jax.random.PRNGKey(0)
    N, C, H, W = 2, 4, 16, 16          # batch, Nemitters, spatial
    std_min, std_max = 0.5, 1.5        # setup_params['blur_std_range']

    k_psf, k_std = jax.random.split(key)
    PSFs = jax.random.uniform(k_psf, (N, C, H, W), dtype=jnp.float32)
    # stds ~ U[std_min, std_max], one per emitter (torch.rand in the module;
    # drawn deterministically here via PRNGKey(0)).
    stds = std_min + (std_max - std_min) * jax.random.uniform(
        k_std, (C, 1), dtype=jnp.float32)

    gauss = gaussian2D_unnormalized((9, 9), 1.0)

    out = blur_layer_forward(PSFs, gauss, stds)
    out = jax.block_until_ready(out)

    # Reference: full 2D per-emitter weights + XLA cross-correlation (same as F.conv2d).
    s2_ref = (stds.astype(jnp.float32) ** 2).reshape(C, 1, 1)
    w2d = (1.0 / (2.0 * pi * s2_ref)) * jnp.power(gauss[None, :, :], 1.0 / s2_ref)
    ref = jax.lax.conv_general_dilated(
        PSFs, w2d[None, :, :, :], window_strides=(1, 1),
        padding=((4, 4), (4, 4)),
        dimension_numbers=("NCHW", "OIHW", "NCHW"))

    assert out.shape == (N, 1, H, W), out.shape
    assert np.allclose(np.asarray(out), np.asarray(ref), atol=2e-5, rtol=2e-5)
    print("KERNEL_OK")
</pallas_src>

<mosaic_0001>
module attributes {stable_mosaic.version = 11 : i64} {
  func.func @kernel(%arg0: i32, %arg1: i32, %arg2: memref<1x1x16x16xf32, #tpu.memory_space<vmem>>, %arg3: memref<36xf32, #tpu.memory_space<smem>>, %arg4: memref<36xf32, #tpu.memory_space<smem>>, %arg5: memref<1x1x16x16xf32, #tpu.memory_space<vmem>>, %arg6: memref<16x24xf32, #tpu.memory_space<vmem>>, %arg7: memref<24x16xf32, #tpu.memory_space<vmem>>) attributes {dimension_semantics = [#tpu.dimension_semantics<parallel>, #tpu.dimension_semantics<arbitrary>], iteration_bounds = array<i64: 2, 4>, scalar_prefetch = 0 : i64, scratch_operands = 2 : i64, tpu.core_type = #tpu.core_type<tc>, window_params = [{transform_indices = @transform_0, window_bounds = array<i64: 1, 1, 16, 16>}, {transform_indices = @transform_1, window_bounds = array<i64: 36>}, {transform_indices = @transform_2, window_bounds = array<i64: 36>}, {transform_indices = @transform_3, window_bounds = array<i64: 1, 1, 16, 16>}]} {
    %c9_i32 = arith.constant 9 : i32
    %0 = arith.muli %arg1, %c9_i32 : i32
    %c0_i32 = arith.constant 0 : i32
    %1 = arith.cmpi eq, %arg1, %c0_i32 : i32
    %2 = arith.extui %1 : i1 to i32
    %c0_i32_0 = arith.constant 0 : i32
    %3 = arith.cmpi ne, %2, %c0_i32_0 : i32
    scf.if %3 {
      %cst_60 = arith.constant 0.000000e+00 : f32
      %106 = vector.broadcast %cst_60 : f32 to vector<1x1x16x16xf32>
      %c0_61 = arith.constant 0 : index
      %c0_62 = arith.constant 0 : index
      %c0_63 = arith.constant 0 : index
      %c0_64 = arith.constant 0 : index
      %107 = vector.load %arg5[%c0_61, %c0_62, %c0_63, %c0_64] : memref<1x1x16x16xf32, #tpu.memory_space<vmem>>, vector<1x1x16x16xf32>
      tpu.vector_store %arg5[%c0_61, %c0_62, %c0_63, %c0_64], %106 {strides = array<i32>} : memref<1x1x16x16xf32, #tpu.memory_space<vmem>>, vector<1x1x16x16xf32>,
    } else {
    }
    %cst = arith.constant 0.000000e+00 : f32
    %4 = vector.broadcast %cst : f32 to vector<16x4xf32>
    %c0 = arith.constant 0 : index
    %c0_1 = arith.constant 0 : index
    %5 = vector.load %arg6[%c0, %c0_1] : memref<16x24xf32, #tpu.memory_space<vmem>>, vector<16x4xf32>
    tpu.vector_store %arg6[%c0, %c0_1], %4 {strides = array<i32>} : memref<16x24xf32, #tpu.memory_space<vmem>>, vector<16x4xf32>,
    %cst_2 = arith.constant 0.000000e+00 : f32
    %6 = vector.broadcast %cst_2 : f32 to vector<16x4xf32>
    %c0_3 = arith.constant 0 : index
    %c20 = arith.constant 20 : index
    %7 = vector.load %arg6[%c0_3, %c20] : memref<16x24xf32, #tpu.memory_space<vmem>>, vector<16x4xf32>
    tpu.vector_store %arg6[%c0_3, %c20], %6 {strides = array<i32>} : memref<16x24xf32, #tpu.memory_space<vmem>>, vector<16x4xf32>,
    %cst_4 = arith.constant 0.000000e+00 : f32
    %8 = vector.broadcast %cst_4 : f32 to vector<4x16xf32>
    %c0_5 = arith.constant 0 : index
    %c0_6 = arith.constant 0 : index
    %9 = vector.load %arg7[%c0_5, %c0_6] : memref<24x16xf32, #tpu.memory_space<vmem>>, vector<4x16xf32>
    tpu.vector_store %arg7[%c0_5, %c0_6], %8 {strides = array<i32>} : memref<24x16xf32, #tpu.memory_space<vmem>>, vector<4x16xf32>,
    %cst_7 = arith.constant 0.000000e+00 : f32
    %10 = vector.broadcast %cst_7 : f32 to vector<4x16xf32>
    %c20_8 = arith.constant 20 : index
    %c0_9 = arith.constant 0 : index
    %11 = vector.load %arg7[%c20_8, %c0_9] : memref<24x16xf32, #tpu.memory_space<vmem>>, vector<4x16xf32>
    tpu.vector_store %arg7[%c20_8, %c0_9], %10 {strides = array<i32>} : memref<24x16xf32, #tpu.memory_space<vmem>>, vector<4x16xf32>,
    %c0_10 = arith.constant 0 : index
    %c0_11 = arith.constant 0 : index
    %c0_12 = arith.constant 0 : index
    %c0_13 = arith.constant 0 : index
    %12 = vector.load %arg2[%c0_10, %c0_11, %c0_12, %c0_13] : memref<1x1x16x16xf32, #tpu.memory_space<vmem>>, vector<1x1x16x16xf32>
    %13 = vector.shape_cast %12 : vector<1x1x16x16xf32> to vector<16x16xf32>
    %c0_14 = arith.constant 0 : index
    %c4 = arith.constant 4 : index
    %14 = vector.load %arg6[%c0_14, %c4] : memref<16x24xf32, #tpu.memory_space<vmem>>, vector<16x16xf32>
    tpu.vector_store %arg6[%c0_14, %c4], %13 {strides = array<i32>} : memref<16x24xf32, #tpu.memory_space<vmem>>, vector<16x16xf32>,
    %c4_i32 = arith.constant 4 : i32
    %15 = arith.addi %0, %c4_i32 : i32
    %16 = arith.index_cast %15 : i32 to index
    %17 = memref.load %arg3[%16] : memref<36xf32, #tpu.memory_space<smem>>
    %c0_15 = arith.constant 0 : index
    %c4_16 = arith.constant 4 : index
    %18 = vector.load %arg6[%c0_15, %c4_16] : memref<16x24xf32, #tpu.memory_space<vmem>>, vector<16x16xf32>
    %19 = vector.broadcast %17 : f32 to vector<16x16xf32>
    %20 = arith.mulf %19, %18 : vector<16x16xf32>
    %c0_i32_17 = arith.constant 0 : i32
    %21 = arith.addi %0, %c0_i32_17 : i32
    %22 = arith.index_cast %21 : i32 to index
    %23 = memref.load %arg3[%22] : memref<36xf32, #tpu.memory_space<smem>>
    %c0_18 = arith.constant 0 : index
    %c0_19 = arith.constant 0 : index
    %24 = vector.load %arg6[%c0_18, %c0_19] : memref<16x24xf32, #tpu.memory_space<vmem>>, vector<16x16xf32>
    %c0_20 = arith.constant 0 : index
    %c8 = arith.constant 8 : index
    %25 = vector.load %arg6[%c0_20, %c8] : memref<16x24xf32, #tpu.memory_space<vmem>>, vector<16x16xf32>
    %26 = arith.addf %24, %25 : vector<16x16xf32>
    %27 = vector.broadcast %23 : f32 to vector<16x16xf32>
    %28 = arith.mulf %27, %26 : vector<16x16xf32>
    %29 = arith.addf %20, %28 : vector<16x16xf32>
    %c1_i32 = arith.constant 1 : i32
    %30 = arith.addi %0, %c1_i32 : i32
    %31 = arith.index_cast %30 : i32 to index
    %32 = memref.load %arg3[%31] : memref<36xf32, #tpu.memory_space<smem>>
    %c0_21 = arith.constant 0 : index
    %c1 = arith.constant 1 : index
    %33 = vector.load %arg6[%c0_21, %c1] : memref<16x24xf32, #tpu.memory_space<vmem>>, vector<16x16xf32>
    %c0_22 = arith.constant 0 : index
    %c7 = arith.constant 7 : index
    %34 = vector.load %arg6[%c0_22, %c7] : memref<16x24xf32, #tpu.memory_space<vmem>>, vector<16x16xf32>
    %35 = arith.addf %33, %34 : vector<16x16xf32>
    %36 = vector.broadcast %32 : f32 to vector<16x16xf32>
    %37 = arith.mulf %36, %35 : vector<16x16xf32>
    %38 = arith.addf %29, %37 : vector<16x16xf32>
    %c2_i32 = arith.constant 2 : i32
    %39 = arith.addi %0, %c2_i32 : i32
    %40 = arith.index_cast %39 : i32 to index
    %41 = memref.load %arg3[%40] : memref<36xf32, #tpu.memory_space<smem>>
    %c0_23 = arith.constant 0 : index
    %c2 = arith.constant 2 : index
    %42 = vector.load %arg6[%c0_23, %c2] : memref<16x24xf32, #tpu.memory_space<vmem>>, vector<16x16xf32>
    %c0_24 = arith.constant 0 : index
    %c6 = arith.constant 6 : index
    %43 = vector.load %arg6[%c0_24, %c6] : memref<16x24xf32, #tpu.memory_space<vmem>>, vector<16x16xf32>
    %44 = arith.addf %42, %43 : vector<16x16xf32>
    %45 = vector.broadcast %41 : f32 to vector<16x16xf32>
    %46 = arith.mulf %45, %44 : vector<16x16xf32>
    %47 = arith.addf %38, %46 : vector<16x16xf32>
    %c3_i32 = arith.constant 3 : i32
    %48 = arith.addi %0, %c3_i32 : i32
    %49 = arith.index_cast %48 : i32 to index
    %50 = memref.load %arg3[%49] : memref<36xf32, #tpu.memory_space<smem>>
    %c0_25 = arith.constant 0 : index
    %c3 = arith.constant 3 : index
    %51 = vector.load %arg6[%c0_25, %c3] : memref<16x24xf32, #tpu.memory_space<vmem>>, vector<16x16xf32>
    %c0_26 = arith.constant 0 : index
    %c5 = arith.constant 5 : index
    %52 = vector.load %arg6[%c0_26, %c5] : memref<16x24xf32, #tpu.memory_space<vmem>>, vector<16x16xf32>
    %53 = arith.addf %51, %52 : vector<16x16xf32>
    %54 = vector.broadcast %50 : f32 to vector<16x16xf32>
    %55 = arith.mulf %54, %53 : vector<16x16xf32>
    %56 = arith.addf %47, %55 : vector<16x16xf32>
    %c4_27 = arith.constant 4 : index
    %c0_28 = arith.constant 0 : index
    %57 = vector.load %arg7[%c4_27, %c0_28] : memref<24x16xf32, #tpu.memory_space<vmem>>, vector<16x16xf32>
    tpu.vector_store %arg7[%c4_27, %c0_28], %56 {strides = array<i32>} : memref<24x16xf32, #tpu.memory_space<vmem>>, vector<16x16xf32>,
    %c4_i32_29 = arith.constant 4 : i32
    %58 = arith.addi %0, %c4_i32_29 : i32
    %59 = arith.index_cast %58 : i32 to index
    %60 = memref.load %arg4[%59] : memref<36xf32, #tpu.memory_space<smem>>
    %c4_30 = arith.constant 4 : index
    %c0_31 = arith.constant 0 : index
    %61 = vector.load %arg7[%c4_30, %c0_31] : memref<24x16xf32, #tpu.memory_space<vmem>>, vector<16x16xf32>
    %62 = vector.broadcast %60 : f32 to vector<16x16xf32>
    %63 = arith.mulf %62, %61 : vector<16x16xf32>
    %c0_i32_32 = arith.constant 0 : i32
    %64 = arith.addi %0, %c0_i32_32 : i32
    %65 = arith.index_cast %64 : i32 to index
    %66 = memref.load %arg4[%65] : memref<36xf32, #tpu.memory_space<smem>>
    %c0_33 = arith.constant 0 : index
    %c0_34 = arith.constant 0 : index
    %67 = vector.load %arg7[%c0_33, %c0_34] : memref<24x16xf32, #tpu.memory_space<vmem>>, vector<16x16xf32>
    %c8_35 = arith.constant 8 : index
    %c0_36 = arith.constant 0 : index
    %68 = vector.load %arg7[%c8_35, %c0_36] : memref<24x16xf32, #tpu.memory_space<vmem>>, vector<16x16xf32>
    %69 = arith.addf %67, %68 : vector<16x16xf32>
    %70 = vector.broadcast %66 : f32 to vector<16x16xf32>
    %71 = arith.mulf %70, %69 : vector<16x16xf32>
    %72 = arith.addf %63, %71 : vector<16x16xf32>
    %c1_i32_37 = arith.constant 1 : i32
    %73 = arith.addi %0, %c1_i32_37 : i32
    %74 = arith.index_cast %73 : i32 to index
    %75 = memref.load %arg4[%74] : memref<36xf32, #tpu.memory_space<smem>>
    %c1_38 = arith.constant 1 : index
    %c0_39 = arith.constant 0 : index
    %76 = vector.load %arg7[%c1_38, %c0_39] : memref<24x16xf32, #tpu.memory_space<vmem>>, vector<16x16xf32>
    %c7_40 = arith.constant 7 : index
    %c0_41 = arith.constant 0 : index
    %77 = vector.load %arg7[%c7_40, %c0_41] : memref<24x16xf32, #tpu.memory_space<vmem>>, vector<16x16xf32>
    %78 = arith.addf %76, %77 : vector<16x16xf32>
    %79 = vector.broadcast %75 : f32 to vector<16x16xf32>
    %80 = arith.mulf %79, %78 : vector<16x16xf32>
    %81 = arith.addf %72, %80 : vector<16x16xf32>
    %c2_i32_42 = arith.constant 2 : i32
    %82 = arith.addi %0, %c2_i32_42 : i32
    %83 = arith.index_cast %82 : i32 to index
    %84 = memref.load %arg4[%83] : memref<36xf32, #tpu.memory_space<smem>>
    %c2_43 = arith.constant 2 : index
    %c0_44 = arith.constant 0 : index
    %85 = vector.load %arg7[%c2_43, %c0_44] : memref<24x16xf32, #tpu.memory_space<vmem>>, vector<16x16xf32>
    %c6_45 = arith.constant 6 : index
    %c0_46 = arith.constant 0 : index
    %86 = vector.load %arg7[%c6_45, %c0_46] : memref<24x16xf32, #tpu.memory_space<vmem>>, vector<16x16xf32>
    %87 = arith.addf %85, %86 : vector<16x16xf32>
    %88 = vector.broadcast %84 : f32 to vector<16x16xf32>
    %89 = arith.mulf %88, %87 : vector<16x16xf32>
    %90 = arith.addf %81, %89 : vector<16x16xf32>
    %c3_i32_47 = arith.constant 3 : i32
    %91 = arith.addi %0, %c3_i32_47 : i32
    %92 = arith.index_cast %91 : i32 to index
    %93 = memref.load %arg4[%92] : memref<36xf32, #tpu.memory_space<smem>>
    %c3_48 = arith.constant 3 : index
    %c0_49 = arith.constant 0 : index
    %94 = vector.load %arg7[%c3_48, %c0_49] : memref<24x16xf32, #tpu.memory_space<vmem>>, vector<16x16xf32>
    %c5_50 = arith.constant 5 : index
    %c0_51 = arith.constant 0 : index
    %95 = vector.load %arg7[%c5_50, %c0_51] : memref<24x16xf32, #tpu.memory_space<vmem>>, vector<16x16xf32>
    %96 = arith.addf %94, %95 : vector<16x16xf32>
    %97 = vector.broadcast %93 : f32 to vector<16x16xf32>
    %98 = arith.mulf %97, %96 : vector<16x16xf32>
    %99 = arith.addf %90, %98 : vector<16x16xf32>
    %c0_52 = arith.constant 0 : index
    %c0_53 = arith.constant 0 : index
    %c0_54 = arith.constant 0 : index
    %c0_55 = arith.constant 0 : index
    %100 = vector.load %arg5[%c0_52, %c0_53, %c0_54, %c0_55] : memref<1x1x16x16xf32, #tpu.memory_space<vmem>>, vector<1x1x16x16xf32>
    %101 = vector.shape_cast %100 : vector<1x1x16x16xf32> to vector<16x16xf32>
    %102 = arith.addf %101, %99 : vector<16x16xf32>
    %c0_56 = arith.constant 0 : index
    %c0_57 = arith.constant 0 : index
    %c0_58 = arith.constant 0 : index
    %c0_59 = arith.constant 0 : index
    %103 = vector.load %arg5[%c0_56, %c0_57, %c0_58, %c0_59] : memref<1x1x16x16xf32, #tpu.memory_space<vmem>>, vector<1x1x16x16xf32>
    %104 = vector.shape_cast %103 : vector<1x1x16x16xf32> to vector<16x16xf32>
    %105 = vector.shape_cast %102 : vector<16x16xf32> to vector<1x1x16x16xf32>
    tpu.vector_store %arg5[%c0_56, %c0_57, %c0_58, %c0_59], %105 {strides = array<i32>} : memref<1x1x16x16xf32, #tpu.memory_space<vmem>>, vector<1x1x16x16xf32>,
    return
  }
  func.func @transform_0(%arg0: i32, %arg1: i32) -> (i32, i32, i32, i32) {
    %c0_i32 = arith.constant 0 : i32
    %c0_i32_0 = arith.constant 0 : i32
    %c0_i32_1 = arith.constant 0 : i32
    return %arg0, %arg1, %c0_i32, %c0_i32_0 : i32, i32, i32, i32
  }
  func.func @transform_1(%arg0: i32, %arg1: i32) -> i32 {
    %c0_i32 = arith.constant 0 : i32
    %c0_i32_0 = arith.constant 0 : i32
    return %c0_i32 : i32
  }
  func.func @transform_2(%arg0: i32, %arg1: i32) -> i32 {
    %c0_i32 = arith.constant 0 : i32
    %c0_i32_0 = arith.constant 0 : i32
    return %c0_i32 : i32
  }
  func.func @transform_3(%arg0: i32, %arg1: i32) -> (i32, i32, i32, i32) {
    %c0_i32 = arith.constant 0 : i32
    %c0_i32_0 = arith.constant 0 : i32
    %c0_i32_1 = arith.constant 0 : i32
    %c0_i32_2 = arith.constant 0 : i32
    return %arg0, %c0_i32, %c0_i32_0, %c0_i32_1 : i32, i32, i32, i32
  }
}

</mosaic_0001>

<bundles_post_ra>
// kernel: tpu_custom_call.1
= control target key start
LH: loop header
LB: loop body
LE: loop exit
PB: predicated region body
PF: predicated region fallthrough
CT: control target
= control target key end

     0   :  { %s1259_s0 = inlined_call_operand.hbm [shape: f32[2,4,16,16], index: 0, kind: input, shape index: {}]   ;;  %s1260_s1 = inlined_call_operand.vmem [shape: f32[36], index: 1, kind: input, shape index: {}]   ;;  %s1261_s2 = inlined_call_operand.vmem [shape: f32[36], index: 2, kind: input, shape index: {}]   ;;  %s1262_s3 = inlined_call_operand.hbm [shape: f32[2,1,16,16], index: 3, kind: output, shape index: {}]  }
   0x1   :  { %1278 = sst [smem:[#allocation23_spill]] %s1260_s1 }
   0x2   :  { %1279 = sst [smem:[#allocation24_spill]] %s1261_s2 }
   0x3   :  { %1280 = sst [smem:[#allocation25_spill]] %s1262_s3 }
   0x4   :  { %8 = vsyncpa [#allocation5], 0 }
   0x5   :  { %10 = vsyncpa [#allocation5 + $0x1], 0 }
   0x6   :  { %11 = vsyncpa [#allocation7], 0 }
   0x7   :  { %12 = vsyncpa [#allocation10], 0 }
   0x8   :  { %13 = vsyncpa [#allocation6], 0 }
   0x9   :  { %15 = vsyncpa [#allocation6 + $0x1], 0  ;;  %s940_s12 = smov 0   ;;  %s942_s13 = smov 0  }
   0xa   :  { %s944_s14 = smov 0   ;;  %s946_s15 = smov 0  }
   0xb   :  { %s948_s16 = smov 0   ;;  %s950_s17 = smov 0  }
   0xc   :  { %s952_s18 = smov 0   ;;  %s954_s19 = smov 0  }
   0xd   :  { %s956_s20 = smov 0   ;;  %s958_s21 = smov 0  }
   0xe   :  { %s960_s22 = smov 0  }
   0xf LB: > { %1281 = sst [smem:[#allocation16_spill]] %s860_s12  ;;  %s555_s23 = sadd.s32 4294967295, %s900_s22   ;;  %s900_s22 = sphi %s960_s22, %s21_s22   ;;  %s896_s21 = sphi %s958_s21, %s1322_s21   ;;  %s892_s20 = sphi %s956_s20, %s1321_s20   ;;  %s888_s19 = sphi %s954_s19, %s1320_s19   ;;  %s884_s18 = sphi %s952_s18, %s1312_s18   ;;  %s880_s17 = sphi %s950_s17, %s1319_s17   ;;  %s876_s16 = sphi %s948_s16, %s1318_s16   ;;  %s872_s15 = sphi %s946_s15, %s1317_s15   ;;  %s868_s14 = sphi %s944_s14, %s1316_s14   ;;  %s864_s13 = sphi %s942_s13, %s1315_s13   ;;  %s860_s12 = sphi %s940_s12, %s1314_s12  }
  0x10   : > { %1282 = sst [smem:[#allocation17_spill]] %s888_s19  ;;  %s556_s24 = sadd.s32 4294967294, %s900_s22  }
  0x11   : > { %1283 = sst [smem:[#allocation18_spill]] %s892_s20  ;;  %p49_p0 = scmp.ne.s32.totalorder %s880_s17, %s876_s16 }
  0x12   : > { %1284 = sst [smem:[#allocation19_spill]] %s900_s22  ;;  %p50_p1 = scmp.eq.s32.totalorder %s900_s22, 0 }
  0x13   : > { %p55_p2 = scmp.ne.s32.totalorder %s876_s16, %s872_s15  ;;  %p1000_p3 = scmp.eq.s32.totalorder %s555_s23, 0 }
  0x14   : > { %p1005_p4 = por %p50_p1, %p49_p0  ;;  %p120_p5 = scmp.ne.s32.totalorder %s868_s14, %s864_s13 }
  0x15   : > { %s1285_s26 = scalar_select %p1000_p3, 1, 0 }
  0x16   : > { %p1013_p6 = por %p1000_p3, %p55_p2  ;;  %p121_p7 = scmp.eq.s32.totalorder %s555_s23, 7 }
  0x17   : > { %p126_p8 = scmp.ne.s32.totalorder %s864_s13, %s860_s12  ;;  %p127_p9 = scmp.eq.s32.totalorder %s556_s24, 7 }
  0x18   : > { %s1287_s29 = scalar_select %p1013_p6, 1, 0 }
  0x19   : > { %p1019_p10 = por %p121_p7, %p120_p5  ;;  %p557_p11 = scmp.ge.s32.totalorder %s900_s22, 1 }
  0x1a   : > { %p1024_p12 = por %p127_p9, %p126_p8  ;;  %p134_p13 = scmp.lt.s32.totalorder %s900_s22, 9 }
  0x1b   : > { %s1288_s30 = scalar_select %p1019_p10, 1, 0 }
  0x1c   : > { %s1290_s4 = scalar_select %p1024_p12, 1, 0 }
  0x1d   : > { %1289 = sst [smem:[#allocation20_spill]] %s1288_s30  ;;  %p1032_p0 = pnand %p557_p11, %p134_p13 }
  0x1e   : > { %1291 = sst [smem:[#allocation21_spill]] %s1290_s4  ;;  %p606_p2 = scmp.lt.s32.totalorder %s900_s22, 8 }
  0x1f   : > { %s1292_s1 = sld [smem:[#allocation23_spill]]  ;;  %p589_p1 = pneg %p1032_p0 }
  0x20   : > { %s1293_s8 = scalar_select %p1032_p0, 1, 0 }
  0x21   : > { %s1294_s2 = sld [smem:[#allocation24_spill]]  ;;  %p1044_p5 = pnand %p589_p1, %p1000_p3 }
  0x22   : > { %p1050_p7 = pnand %p606_p2, %p1005_p4 }
  0x23   : > { %p716_p9 = pneg %p1044_p5 }
  0x24   : > { %s1296_s23 = scalar_select %p1050_p7, 1, 0 }
  0x25   : > { %s147_s7 = sshll.u32 %s1292_s1, 4  ;;  %s148_s7 = int_to_ptr.vmem [resolvable:$true] %s147_s7 }
  0x26   : > { %s714_s24 = scalar_lea.vmem %s148_s7, 16  ;;  %p722_p12 = scmp.lt.s32.totalorder %s148_s7, %s148_s7 }
  0x27   : > { %s158_s11 = sshll.u32 %s1294_s2, 4  ;;  %p715_p8 = scmp.ne.s32.totalorder %s148_s7, %s714_s24  ;;  %s159_s11 = int_to_ptr.vmem [resolvable:$true] %s158_s11 }
  0x28   : > { %p723_p10 = scmp.lt.s32.totalorder %s714_s24, %s714_s24 }
  0x29   : > { %p717_p11 = pnand %p716_p9, %p715_p8 }
  0x2a   : > { %p724_p6 = por %p723_p10, %p722_p12 }
  0x2b   : > { %p718_p13 = pneg %p717_p11 }
  0x2d   : > { %p725_p1 = pnand %p724_p6, %p718_p13 }
  0x2f   : > { %728 = shalt.err (!%p725_p1)
}
  0x30   : > { %s902_s5 = smov [#allocation8]   ;;  %s729_s28 = scalar_lea.vmem %s159_s11, 16 }
  0x31   : > { %592 = dma.vmem_to_smem (!%p1044_p5), %s148_s7, 16, %s902_s5, [#allocation7]  }
  0x32   : > { %p730_p4 = scmp.ne.s32.totalorder %s159_s11, %s729_s28  ;;  %p737_p0 = scmp.lt.s32.totalorder %s159_s11, %s159_s11 }
  0x33   : > { %p738_p7 = scmp.lt.s32.totalorder %s729_s28, %s729_s28 }
  0x34   : > { %p732_p2 = pnand %p730_p4, %p716_p9 }
  0x35   : > { %p739_p8 = por %p738_p7, %p737_p0 }
  0x36   : > { %p733_p3 = pneg %p732_p2 }
  0x38   : > { %p740_p11 = pnand %p739_p8, %p733_p3 }
  0x3a   : > { %743 = shalt.err (!%p740_p11)
}
  0x3b   : > { %s903_s6 = smov [#allocation9]   ;;  %s30_s7 = sadd.s32 1, %s892_s20 }
  0x3c   : > { %595 = dma.vmem_to_smem (!%p1044_p5), %s159_s11, 16, %s903_s6, [#allocation10]  }
  0x3d   : > { %p31_p6 = scmp.ge.s32.totalorder %s30_s7, 4  ;;  %s33_s9 = sadd.s32 1, %s896_s21 }
  0x3e   : > { %s169_s10 = sand.u32 1, %s880_s17   ;;  %s562_s24 = sshll.u32 %s892_s20, 1 }
  0x3f   : > { %s1324_s7 = smov (%p31_p6, %s30_s7), 0  ;;  %s1326_s9 = smov (!%p31_p6, %s33_s9), %s896_s21 }
  0x40   : > { %1297 = sst [smem:[#allocation22_spill]] %s1324_s7  ;;  %s38_s15 = ssub.s32 %s892_s20, %s1324_s7 }
  0x41   : > { %p35_p3 = scmp.ge.s32.totalorder %s1326_s9, 2  ;;  %s561_s5 = sshll.u32 %s169_s10, 4 }
  0x42   : > { %s563_s28 = sshll.u32 %s896_s21, 3  ;;  %s173_s6 = scalar_lea.vmem [#allocation4], %s561_s5 }
  0x43   : > { %s1328_s9 = smov (%p35_p3, %s1326_s9), 0  ;;  %s179_s11 = sadd.s32 %s563_s28, %s562_s24 }
  0x44   : > { %s182_s25 = sshll.u32 %s173_s6, 4  ;;  %s37_s27 = ssub.s32 %s896_s21, %s1328_s9  ;;  %s183_s25 = int_to_ptr.vmem [resolvable:$true] %s182_s25 }
  0x45   : > { %s564_s1 = sshll.u32 %s179_s11, 7  ;;  %s39_s2 = sor.u32 %s38_s15, %s37_s27 }
  0x46   : > { %p108_p10 = scmp.eq.s32.totalorder %s37_s27, 0  ;;  %p40_p12 = scmp.eq.s32.totalorder %s39_s2, 0 }
  0x47   : > { %s181_s22 = scalar_lea.hbm %s1259_s0, %s564_s1  ;;  %s1298_s7 = sadd.s32 1, %s868_s14 }
  0x48   : > { %s1080_s20 = scalar_select %p108_p10, %s868_s14, %s1298_s7  }
  0x49   : > { %s1299_s3 = sadd.s32 1, %s880_s17  ;;  %s170_s19 = scalar_lea.sflag [#allocation5], %s169_s10 }
  0x4a   : > { %s1085_s30 = scalar_select %p40_p12, %s880_s17, %s1299_s3  }
  0x4b   : > { %p1300_p0 = scmp.ne.s32.totalorder %s1296_s23, 0  ;;  %s757_s24 = scalar_lea.vmem %s183_s25, 256 }
  0x4c   : > { %p758_p7 = scmp.ne.s32.totalorder %s183_s25, %s757_s24  ;;  %s904_s27 = smov [#allocation4]  }
  0x4d   : > { %p746_p5 = pneg %p1300_p0  ;;  %s762_s2 = sshll.u32 %s904_s27, 4  ;;  %s763_s2 = int_to_ptr.vmem [resolvable:$false] %s762_s2 }
  0x4e   : > { %s764_s15 = scalar_lea.vmem %s763_s2, 512  ;;  %p765_p1 = scmp.lt.s32.totalorder %s183_s25, %s763_s2 }
  0x4f   : > { %p760_p9 = pnand %p758_p7, %p746_p5  ;;  %p766_p4 = scmp.lt.s32.totalorder %s764_s15, %s757_s24 }
  0x51   : > { %p761_p13 = pneg %p760_p9  ;;  %p767_p2 = por %p766_p4, %p765_p1 }
  0x53   : > { %p768_p8 = pnand %p767_p2, %p761_p13 }
  0x55   : > { %771 = shalt.err (!%p768_p8)
}
  0x56   : > { %s905_s1 = smov 128   ;;  %s906_s3 = smov 8  }
  0x57   : > { %599 = dma.hbm_to_vmem [thread:$0]  (!%p1300_p0), %s181_s22, 256, %s183_s25, %s170_s19, %s905_s1, %s905_s1, %s906_s3  }
  0x58   : > { %p1301_p11 = scmp.ne.s32.totalorder %s1293_s8, 0 }
  0x59   : > { %s196_s12 = sand.u32 (!%p1301_p11), 1, %s876_s16   ;;  %p1302_p6 = scmp.ne.s32.totalorder (!%p1301_p11), %s1287_s29, 0 }
  0x5a   : > { %194 = sbr.rel (%p1301_p11) target bundleno = 642 (0x282), region = 32  ;;  %s1094_s4 = sshll.u32 (!%p1301_p11), %s196_s12, 4 }
  0x5b   : > { %s197_s7 = scalar_lea.sflag (!%p1301_p11), [#allocation5], %s196_s12  ;;  %s200_s10 = scalar_lea.vmem (!%p1301_p11), [#allocation4], %s1094_s4 }
  0x5f   : > { %843 = dma.done.wait (%p1302_p6), %s197_s7, 256  }
  0x60   : > { %845 = vsyncadd (%p1302_p6), %s197_s7, 4294967040  ;;  %p1303_p3 = scmp.ne.s32.totalorder %s1285_s26, 0 }
  0x62   : > { %847 = dma.done.wait (%p1303_p3), [#allocation7], 16  }
  0x63   : > { %849 = vsyncadd (%p1303_p3), [#allocation7], 4294967280 }
  0x64   : > { %851 = dma.done.wait (%p1303_p3), [#allocation10], 16  }
  0x65   : > { %853 = vsyncadd (%p1303_p3), [#allocation10], 4294967280 }
  0x66   : > { %213 = sfence }
  0x67   : > { %s229_s19 = sand.u32 1, %s864_s13   ;;  %s1111_s22 = smul.u32 9, %s884_s18 }
  0x68   : > { %s569_s25 = sshll.u32 %s229_s19, 4  ;;  %p570_p10 = scmp.ne.s32.totalorder %s884_s18, 0 }
  0x69   : > { %s1115_s29 = scalar_lea.vmem [#allocation11], %s569_s25 }
  0x6a   : > { %236 = sbr.rel (%p570_p10) target bundleno = 113 (0x71), region = 48 }
  0x6f   : > { %vm237_vm0 = vcmask 130048   ;;  %v907_v0 = vmov 0.0  }
  0x70   : > { %238 = vst.msk [vmem:[%s1115_s29] sm:$0xff] %vm237_vm0, %v907_v0  ;;  %239 = vst.msk [vmem:[%s1115_s29 + $0x8] sm:$0xff] %vm237_vm0, %v907_v0 }
  0x71 PF: > { %v249_v1 = vld [vmem:[%s200_s10] sm:$0xff]  ;;  %vm240_vm1 = vcmask 31744   ;;  %s908_s26 = smov 4   ;;  %v909_v2 = vmov 0.0   ;;  %vm243_vm2 = vcmask 195744   ;;  %vm246_vm3 = vcmask 125952  }
  0x72   : > { %253 = vrot.lane.b32.xlu0 %v249_v1, %s908_s26  ;;  %241 = vst.msk [vmem:[#allocation2] sm:$0xff] %vm240_vm1, %v909_v2  ;;  %242 = vst.msk [vmem:[#allocation2 + $0x8] sm:$0xff] %vm240_vm1, %v909_v2  ;;  %v250_v3 = vld [vmem:[%s200_s10 + $0x8] sm:$0xff]  ;;  %vm259_vm4 = vcmask 162848   ;;  %s910_s18 = smov 122   ;;  %s911_s8 = smov 120  }
  0x73   : > { %244 = vst.msk [vmem:[#allocation2] sm:$0xff] %vm243_vm2, %v909_v2  ;;  %245 = vst.msk [vmem:[#allocation2 + $0x8] sm:$0xff] %vm243_vm2, %v909_v2  ;;  %s912_s23 = smov 124   ;;  %s913_s5 = smov 126   ;;  %vm370_vm5 = vcmask 130048  }
  0x74   : > { %247 = vst.msk [vmem:[#allocation3] sm:$0xf] %vm246_vm3, %v909_v2  ;;  %248 = vst.msk [vmem:[#allocation3 + $0x14] sm:$0xf] %vm246_vm3, %v909_v2  ;;  %s269_s28 = sld [smem:[#allocation8 + %s1111_s22]]  ;;  %s293_s11 = sadd.s32 1, %s1111_s22 }
  0x75   : > { %s294_s6 = sld [smem:[#allocation8 + %s293_s11]]  ;;  %s316_s24 = sadd.s32 2, %s1111_s22 }
  0x76   : > { %255 = vrot.lane.b32.xlu0 %v250_v3, %s908_s26  ;;  %s1143_s27 = sld [smem:[#allocation8 + %s316_s24]]  ;;  %s339_s2 = sadd.s32 3, %s1111_s22 }
  0x77   : > { %s340_s15 = sld [smem:[#allocation8 + %s339_s2]]  ;;  %s914_s1 = smov 3  }
  0x78   : > { %s915_s3 = smov 2   ;;  %s916_s12 = smov 1  }
  0x79   : > { %s262_s4 = sadd.s32 4, %s1111_s22  ;;  %s379_s25 = sld [smem:[#allocation9 + %s1111_s22]] }
  0x7a   : > { %v280_v9 = vstv %s269_s28  ;;  %s263_s7 = sld [smem:[#allocation8 + %s262_s4]]  ;;  %s446_s28 = sshll.u32 %s1115_s29, 4  ;;  %s1191_s28 = int_to_ptr.vmem [resolvable:$true] %s446_s28 }
  0x7b   : > { %v303_v14 = vstv %s294_s6  ;;  %s373_s10 = sld [smem:[#allocation9 + %s262_s4]] }
  0x7c   : > { %v326_v21 = vstv %s1143_s27  ;;  %s1304_s22 = sld [smem:[#allocation17_spill]] }
  0x7d   : > { %v349_v28 = vstv %s340_s15  ;;  %s772_s15 = scalar_lea.vmem %s1191_s28, 256 }
  0x7e   : > { %p773_p12 = scmp.ne.s32.totalorder %s1191_s28, %s772_s15 }
  0x7f   : > { %v385_v0 = vstv %s379_s25 }
  0x80   : > { %v266_v37 = vstv %s263_s7 }
  0x81   : > { %v376_v57 = vstv %s373_s10 }
  0xe4   : > { %v254_v4 = vpop.permute.xlu0 %253 }
  0xe5   : > { %260 = vst.msk [vmem:[#allocation2] sm:$0xff] %vm259_vm4, %v254_v4 }
  0xe8   : > { %v256_v5 = vpop.permute.xlu0 %255 }
  0xe9   : > { %261 = vst.msk [vmem:[#allocation2 + $0x8] sm:$0xff] %vm259_vm4, %v256_v5 }
  0xec   : > { %v1122_v6 = vld [vmem:[#allocation2] sm:$0xff] }
  0xed   : > { %295 = vrot.lane.b32.xlu0 %v1122_v6, %s910_s18  ;;  %272 = vrot.lane.b32.xlu1 %v1122_v6, %s911_s8  ;;  %v267_v40 = vmul.f32 %v266_v37, %v1122_v6 }
  0xf0   : > { %v1126_v7 = vld [vmem:[#allocation2 + $0x8] sm:$0xff] }
  0xf1   : > { %318 = vrot.lane.b32.xlu0 %v1122_v6, %s912_s23  ;;  %274 = vrot.lane.b32.xlu1 %v1126_v7, %s911_s8  ;;  %v268_v45 = vmul.f32 %v266_v37, %v1126_v7  ;;  %s1177_s8 = sld [smem:[#allocation9 + %s339_s2]]  ;;  %s1199_s2 = scalar_lea.sflag [#allocation6], %s229_s19 }
  0xf5   : > { %341 = vrot.lane.b32.xlu0 %v1122_v6, %s913_s5  ;;  %297 = vrot.lane.b32.xlu1 %v1126_v7, %s910_s18  ;;  %s1173_s18 = sld [smem:[#allocation9 + %s316_s24]] }
  0xf6   : > { %s1306_s24 = sld [smem:[#allocation25_spill]] }
  0xf9   : > { %320 = vrot.lane.b32.xlu1 %v1126_v7, %s912_s23 }
  0xfd   : > { %343 = vrot.lane.b32.xlu1 %v1126_v7, %s913_s5  ;;  %s576_s5 = sshll.u32 %s1304_s22, 8 }
  0xfe   : > { %s1189_s27 = scalar_lea.hbm %s1306_s24, %s576_s5 }
 0x15f   : > { %v296_v8 = vpop.permute.xlu0 %295  ;;  %v273_v10 = vpop.permute.xlu1 %272 }
 0x160   : > { %v278_v11 = vadd.f32 %v273_v10, %v1122_v6  ;;  %v301_v12 = vadd.f32 %v296_v8, %v1122_v6 }
 0x162   : > { %v281_v13 = vmul.f32 %v280_v9, %v278_v11  ;;  %v304_v18 = vmul.f32 %v303_v14, %v301_v12 }
 0x163   : > { %v319_v15 = vpop.permute.xlu0 %318  ;;  %v275_v16 = vpop.permute.xlu1 %274 }
 0x164   : > { %v279_v17 = vadd.f32 %v275_v16, %v1126_v7  ;;  %285 = vrot.lane.b32.xlu0 %v281_v13, %s908_s26  ;;  %v324_v19 = vadd.f32 %v319_v15, %v1122_v6 }
 0x166   : > { %v282_v20 = vmul.f32 %v280_v9, %v279_v17  ;;  %v327_v25 = vmul.f32 %v326_v21, %v324_v19 }
 0x167   : > { %v342_v22 = vpop.permute.xlu0 %341  ;;  %v298_v23 = vpop.permute.xlu1 %297 }
 0x168   : > { %v302_v24 = vadd.f32 %v298_v23, %v1126_v7  ;;  %308 = vrot.lane.b32.xlu0 %v304_v18, %s914_s1  ;;  %287 = vrot.lane.b32.xlu1 %v282_v20, %s908_s26  ;;  %v347_v26 = vadd.f32 %v342_v22, %v1122_v6  ;;  %s1168_s26 = sld [smem:[#allocation9 + %s293_s11]]  ;;  %v409_v22 = vstv %s1173_s18 }
 0x16a   : > { %v305_v27 = vmul.f32 %v303_v14, %v302_v24  ;;  %v350_v31 = vmul.f32 %v349_v28, %v347_v26 }
 0x16b   : > { %v321_v29 = vpop.permute.xlu1 %320 }
 0x16c   : > { %v325_v30 = vadd.f32 %v321_v29, %v1126_v7  ;;  %331 = vrot.lane.b32.xlu0 %v327_v25, %s915_s3  ;;  %310 = vrot.lane.b32.xlu1 %v305_v27, %s914_s1  ;;  %s917_s1 = smov [#allocation11]  }
 0x16e   : > { %v328_v32 = vmul.f32 %v326_v21, %v325_v30  ;;  %v397_v2 = vstv %s1168_s26  ;;  %v421_v30 = vstv %s1177_s8 }
 0x16f   : > { %v344_v33 = vpop.permute.xlu1 %343 }
 0x170   : > { %v348_v34 = vadd.f32 %v344_v33, %v1126_v7  ;;  %354 = vrot.lane.b32.xlu0 %v350_v31, %s916_s12  ;;  %333 = vrot.lane.b32.xlu1 %v328_v32, %s915_s3  ;;  %s776_s3 = sshll.u32 %s917_s1, 4  ;;  %s777_s3 = int_to_ptr.vmem [resolvable:$false] %s776_s3 }
 0x171   : > { %p779_p9 = scmp.lt.s32.totalorder %s1191_s28, %s777_s3 }
 0x172   : > { %v351_v35 = vmul.f32 %v349_v28, %v348_v34 }
 0x174   : > { %356 = vrot.lane.b32.xlu1 %v351_v35, %s916_s12  ;;  %s778_s12 = scalar_lea.vmem %s777_s3, 512 }
 0x175   : > { %p780_p13 = scmp.lt.s32.totalorder %s778_s12, %s772_s15 }
 0x177   : > { %p781_p1 = por %p780_p13, %p779_p9 }
 0x1d6   : > { %v286_v36 = vpop.permute.xlu0 %285 }
 0x1d7   : > { %v291_v41 = vadd.f32 %v286_v36, %v267_v40  ;;  %v427_v40 = vld [vmem:[%s1115_s29 + $0x8] sm:$0xff] }
 0x1da   : > { %v309_v38 = vpop.permute.xlu0 %308  ;;  %v288_v39 = vpop.permute.xlu1 %287 }
 0x1db   : > { %v314_v44 = vadd.f32 %v309_v38, %v291_v41  ;;  %v292_v46 = vadd.f32 %v288_v39, %v268_v45  ;;  %v426_v39 = vld [vmem:[%s1115_s29] sm:$0xff] }
 0x1de   : > { %v332_v42 = vpop.permute.xlu0 %331  ;;  %v311_v43 = vpop.permute.xlu1 %310 }
 0x1df   : > { %v337_v47 = vadd.f32 %v332_v42, %v314_v44  ;;  %v315_v50 = vadd.f32 %v311_v43, %v292_v46 }
 0x1e2   : > { %v355_v48 = vpop.permute.xlu0 %354  ;;  %v334_v49 = vpop.permute.xlu1 %333 }
 0x1e3   : > { %v360_v51 = vadd.f32 %v355_v48, %v337_v47  ;;  %v338_v52 = vadd.f32 %v334_v49, %v315_v50 }
 0x1e5   : > { %364 = vrot.lane.b32.xlu0 %v360_v51, %s912_s23 }
 0x1e6   : > { %v357_v53 = vpop.permute.xlu1 %356 }
 0x1e7   : > { %v361_v54 = vadd.f32 %v357_v53, %v338_v52 }
 0x1e9   : > { %366 = vrot.lane.b32.xlu1 %v361_v54, %s912_s23  ;;  %s1305_s23 = sld [smem:[#allocation20_spill]] }
 0x1ef   : > { %p1307_p0 = scmp.ne.s32.totalorder %s1305_s23, 0 }
 0x1f1   : > { %p774_p5 = pnand %p773_p12, %p1307_p0 }
 0x1f3   : > { %p775_p7 = pneg %p774_p5 }
 0x1f5   : > { %p782_p4 = pnand %p781_p1, %p775_p7 }
 0x257   : > { %v365_v55 = vpop.permute.xlu0 %364 }
 0x258   : > { %371 = vst.msk [vmem:[#allocation3 + $0x4] sm:$0xff] %vm370_vm5, %v365_v55 }
 0x25b   : > { %v367_v56 = vpop.permute.xlu1 %366 }
 0x25c   : > { %372 = vst.msk [vmem:[#allocation3 + $0xc] sm:$0xff] %vm370_vm5, %v367_v56 }
 0x25f   : > { %v374_v58 = vld [vmem:[#allocation3 + $0x4] sm:$0xff] }
 0x260   : > { %v380_v59 = vld [vmem:[#allocation3] sm:$0xff]  ;;  %v377_v8 = vmul.f32 %v376_v57, %v374_v58 }
 0x261   : > { %v391_v60 = vld [vmem:[#allocation3 + $0x1] sm:$0xff] }
 0x262   : > { %v403_v1 = vld [vmem:[#allocation3 + $0x2] sm:$0xff] }
 0x263   : > { %v375_v61 = vld [vmem:[#allocation3 + $0xc] sm:$0xff]  ;;  %v415_v25 = vld [vmem:[#allocation3 + $0x3] sm:$0xff] }
 0x264   : > { %v381_v62 = vld [vmem:[#allocation3 + $0x8] sm:$0xff]  ;;  %v382_v63 = vld [vmem:[#allocation3 + $0x10] sm:$0xff]  ;;  %v378_v9 = vmul.f32 %v376_v57, %v375_v61 }
 0x265   : > { %v383_v3 = vadd.f32 %v381_v62, %v380_v59  ;;  %v384_v4 = vadd.f32 %v382_v63, %v381_v62  ;;  %v392_v5 = vld [vmem:[#allocation3 + $0x9] sm:$0xff] }
 0x266   : > { %v393_v6 = vld [vmem:[#allocation3 + $0x7] sm:$0xff]  ;;  %v394_v7 = vld [vmem:[#allocation3 + $0xf] sm:$0xff] }
 0x267   : > { %v395_v10 = vadd.f32 %v393_v6, %v391_v60  ;;  %v396_v11 = vadd.f32 %v394_v7, %v392_v5  ;;  %v404_v12 = vld [vmem:[#allocation3 + $0xa] sm:$0xff]  ;;  %v386_v15 = vmul.f32 %v385_v0, %v383_v3  ;;  %v387_v16 = vmul.f32 %v385_v0, %v384_v4 }
 0x268   : > { %v405_v13 = vld [vmem:[#allocation3 + $0x6] sm:$0xff]  ;;  %v406_v14 = vld [vmem:[#allocation3 + $0xe] sm:$0xff] }
 0x269   : > { %v407_v17 = vadd.f32 %v405_v13, %v403_v1  ;;  %v408_v18 = vadd.f32 %v406_v14, %v404_v12  ;;  %v416_v19 = vld [vmem:[#allocation3 + $0xb] sm:$0xff]  ;;  %v398_v23 = vmul.f32 %v397_v2, %v395_v10  ;;  %v399_v24 = vmul.f32 %v397_v2, %v396_v11 }
 0x26a   : > { %v417_v20 = vld [vmem:[#allocation3 + $0x5] sm:$0xff]  ;;  %v418_v21 = vld [vmem:[#allocation3 + $0xd] sm:$0xff]  ;;  %v388_v26 = vadd.f32 %v386_v15, %v377_v8  ;;  %v389_v27 = vadd.f32 %v387_v16, %v378_v9 }
 0x26b   : > { %v419_v28 = vadd.f32 %v417_v20, %v415_v25  ;;  %v420_v29 = vadd.f32 %v418_v21, %v416_v19  ;;  %v410_v33 = vmul.f32 %v409_v22, %v407_v17  ;;  %v411_v34 = vmul.f32 %v409_v22, %v408_v18 }
 0x26c   : > { %v400_v31 = vadd.f32 %v398_v23, %v388_v26  ;;  %v401_v32 = vadd.f32 %v399_v24, %v389_v27 }
 0x26d   : > { %v422_v37 = vmul.f32 %v421_v30, %v419_v28  ;;  %v423_v38 = vmul.f32 %v421_v30, %v420_v29 }
 0x26e   : > { %v412_v35 = vadd.f32 %v410_v33, %v400_v31  ;;  %v413_v36 = vadd.f32 %v411_v34, %v401_v32 }
 0x270   : > { %v424_v41 = vadd.f32 %v422_v37, %v412_v35  ;;  %v425_v42 = vadd.f32 %v423_v38, %v413_v36 }
 0x272   : > { %v428_v43 = vadd.f32 %v426_v39, %v424_v41  ;;  %v429_v44 = vadd.f32 %v427_v40, %v425_v42 }
 0x274   : > { %430 = vst.msk [vmem:[%s1115_s29] sm:$0xff] %vm370_vm5, %v428_v43  ;;  %431 = vst.msk [vmem:[%s1115_s29 + $0x8] sm:$0xff] %vm370_vm5, %v429_v44 }
 0x275   : > { %785 = shalt.err (!%p782_p4)
}
 0x276   : > { %s786_s19 = scalar_lea.hbm %s1189_s27, 256  ;;  %s790_s7 = scalar_lea.hbm %s1306_s24, 512 }
 0x277   : > { %p787_p2 = scmp.ne.s32.totalorder %s1189_s27, %s786_s19  ;;  %p791_p6 = scmp.lt.s32.totalorder %s1189_s27, %s1306_s24 }
 0x278   : > { %p792_p3 = scmp.lt.s32.totalorder %s790_s7, %s786_s19 }
 0x279   : > { %p788_p8 = pnand %p787_p2, %p1307_p0 }
 0x27a   : > { %p793_p10 = por %p792_p3, %p791_p6 }
 0x27b   : > { %p789_p11 = pneg %p788_p8 }
 0x27d   : > { %p794_p12 = pnand %p793_p10, %p789_p11 }
 0x27f   : > { %797 = shalt.err (!%p794_p12)
}
 0x280   : > { %s918_s26 = smov 128   ;;  %s919_s18 = smov 8  }
 0x281   : > { %587 = dma.vmem_to_hbm [thread:$0]  (%p1307_p0), %s1191_s28, 256, %s1189_s27, %s1199_s2, %s918_s26, %s918_s26, %s919_s18  }
 0x282 PF: > { %s1308_s8 = sld [smem:[#allocation19_spill]] }
 0x283   : > { %s1309_s22 = sld [smem:[#allocation16_spill]] }
 0x284   : > { %s1310_s5 = sld [smem:[#allocation21_spill]] }
 0x288   : > { %p609_p5 = scmp.ge.s32.totalorder %s1308_s8, 2 }
 0x289   : > { %s461_s11 = sand.u32 1, %s1309_s22  }
 0x28a   : > { %p1311_p7 = scmp.ne.s32.totalorder %s1310_s5, 0  ;;  %s462_s6 = scalar_lea.sflag [#allocation6], %s461_s11 }
 0x28c   : > { %p601_p9 = pnand %p609_p5, %p1311_p7 }
 0x28e   : > { %p602_p13 = pneg %p601_p9 }
 0x290   : > { %855 = dma.done.wait (%p602_p13), %s462_s6, 256  }
 0x291   : > { %857 = vsyncadd (%p602_p13), %s462_s6, 4294967040  ;;  %s21_s22 = sadd.s32 1, %s1308_s8   ;;  %s1312_s18 = sld [smem:[#allocation18_spill]] }
 0x292   : > { %p18_p1 = scmp.ge.s32.totalorder %s21_s22, 10   ;;  %s1313_s23 = sld [smem:[#allocation22_spill]] }
 0x293   : > { %s1314_s12 = smov %s864_s13  ;;  %s1315_s13 = smov %s868_s14 }
 0x294   : > { %s1316_s14 = smov %s1080_s20  ;;  %s1317_s15 = smov %s876_s16 }
 0x295   : > { %s1318_s16 = smov %s880_s17  ;;  %s1319_s17 = smov %s1085_s30 }
 0x296   : > { %s1320_s19 = smov %s896_s21  ;;  %s1322_s21 = smov %s1328_s9 }
 0x297   :  { %20 = sbr.rel (!%p18_p1) target bundleno = 15 (0xf), region = 90 }
 0x298   : > { %s1321_s20 = smov %s1313_s23 }
 0x29c   :  { %467 = vsyncpa [#allocation5], 1 }
 0x29d   :  { %469 = vsyncpa [#allocation5 + $0x1], 1 }
 0x29e   :  { %470 = vsyncpa [#allocation6], 1 }
 0x29f   :  { %472 = vsyncpa [#allocation6 + $0x1], 1 }
 0x2a0   :  { %473 = vsyncpa [#allocation7], 1 }
 0x2a1   :  { %475 = vsyncpa [#allocation7 + $0x1], 1 }
 0x2a2   :  { %476 = vsyncpa [#allocation10], 1 }

</bundles_post_ra>
